<compile_context>
chip_gen: v7x
topology: tpu7x:2x2x1
jax: 0.10.0
libtpu: 0.0.40
codegen_flags: <defaults>
</compile_context>

<pallas_src>
import jax
import jax.numpy as jnp
from jax.experimental import pallas as pl
from jax.experimental.pallas import tpu as pltpu


def _round_up(x, m):
    return ((x + m - 1) // m) * m


def _cdiv(a, b):
    return -(-a // b)


def _rnd_target_kernel(x_ref, w1_ref, b1_ref, w2_ref, b2_ref, o_ref):
    # x_ref:  [TB, K]    f32   streamed batch tile of states
    # w1_ref: [K,  Mp]   bf16  resident (constant index_map)
    # b1_ref: [1,  Mp]   f32   resident
    # w2_ref: [1,  Mp]   f32   second Linear's weight as a row (output_dim == 1)
    # b2_ref: [1,  1]    f32   SMEM scalar
    # o_ref:  [1, 1, TB] f32   lane-dense output row for this batch tile
    x = x_ref[...].astype(jnp.bfloat16)                      # VPU cast, right before MXU
    h = jnp.dot(x, w1_ref[...], preferred_element_type=jnp.float32)
    h = jnp.maximum(h + b1_ref[...], 0.0)                    # bias + ReLU in f32 (VPU)
    # Second Linear as [1, Mp] x [Mp, TB]: contract the Mp axis of h directly,
    # producing a lane-dense (1, TB) row (no masked single-lane stores).
    out_row = jax.lax.dot_general(
        w2_ref[...], h,
        dimension_numbers=(((1,), (1,)), ((), ())),
        preferred_element_type=jnp.float32,
    ) + b2_ref[0, 0]
    o_ref[...] = out_row[None].astype(o_ref.dtype)           # (1, TB) -> (1, 1, TB)


def prepare_rnd_target_params(w1, b1, w2, b2):
    """One-time layout prep (call at init / parameter-update time, NOT per forward).

    w1: [state_dim, mid_dim], b1: [mid_dim]   (Linear 1, weight pre-transposed [in, out])
    w2: [mid_dim, 1],         b2: [1]         (Linear 2, output_dim == 1)
    Returns (w1_p bf16 [K, Mp], b1_p f32 [1, Mp], w2_row f32 [1, Mp], b2_s f32 [1, 1]).
    Padding mid_dim -> Mp with zeros is semantically free: ReLU(0 + 0) = 0 and the
    padded w2 entries are 0.
    """
    K, mid_dim = w1.shape
    assert w2.shape[0] == mid_dim and w2.shape[1] == 1, \
        "kernel is specialized for the module default output_dim=1"
    Mp = _round_up(mid_dim, 128)
    w1_p = jnp.zeros((K, Mp), jnp.bfloat16).at[:, :mid_dim].set(w1.astype(jnp.bfloat16))
    b1_p = jnp.zeros((1, Mp), jnp.float32).at[0, :mid_dim].set(b1.astype(jnp.float32))
    w2_row = jnp.zeros((1, Mp), jnp.float32).at[0, :mid_dim].set(w2[:, 0].astype(jnp.float32))
    b2_s = b2.reshape(1, 1).astype(jnp.float32)
    return w1_p, b1_p, w2_row, b2_s


def rnd_target_forward(state, params, *, batch_tile=512):
    """state: [B, state_dim] f32; params from prepare_rnd_target_params().
       Returns [B, 1] f32."""
    w1_p, b1_p, w2_row, b2_s = params
    B, K = state.shape
    Kw, Mp = w1_p.shape
    assert K == Kw, "state_dim mismatch between state and prepared params"

    # Batch tile: multiple of 16 (bf16 sublane packing); at least 2 grid steps
    # when B allows it so the "parallel" axis can occupy both v7x TensorCores.
    bt = max(16, _round_up(batch_tile, 16))
    TB = min(bt, _round_up(_cdiv(B, 2), 16)) if B > 16 else 16
    G = _cdiv(B, TB)
    Bp = G * TB

    x = state if state.dtype == jnp.float32 else state.astype(jnp.float32)
    if Bp != B:  # only materialize a padded copy for ragged tails
        x = jnp.zeros((Bp, K), jnp.float32).at[:B].set(x)

    # Scoped-VMEM estimate; only raise the limit when the default (16 MiB on
    # v5e, 32 MiB on v6e/v7x) would be tight.  Cap at 64 MiB (v7x physical).
    est_bytes = (2 * TB * K * 4                       # double-buffered x tiles (f32)
                 + 2 * (K * Mp * 2 + 2 * Mp * 4)      # resident weights (conservatively x2)
                 + 2 * TB * 4                         # double-buffered output rows
                 + 2 * TB * Mp * 4)                   # h intermediate + temporaries
    vmem_limit = None
    if est_bytes > 12 * 1024 * 1024:
        vmem_limit = min(2 * est_bytes, 64 * 1024 * 1024)

    out = pl.pallas_call(
        _rnd_target_kernel,
        out_shape=jax.ShapeDtypeStruct((G, 1, TB), jnp.float32),
        grid=(G,),
        in_specs=[
            pl.BlockSpec((TB, K), lambda i: (i, 0)),            # streamed state tiles
            pl.BlockSpec((K, Mp), lambda i: (0, 0)),            # resident weights
            pl.BlockSpec((1, Mp), lambda i: (0, 0)),
            pl.BlockSpec((1, Mp), lambda i: (0, 0)),
            pl.BlockSpec(memory_space=pltpu.MemorySpace.SMEM),  # b2 scalar in SMEM
        ],
        out_specs=pl.BlockSpec((1, 1, TB), lambda i: (i, 0, 0)),  # lane-dense rows
        compiler_params=pltpu.CompilerParams(
            dimension_semantics=("parallel",),
            vmem_limit_bytes=vmem_limit),
    )(x, w1_p, b1_p, w2_row, b2_s)
    return out.reshape(Bp, 1)[:B]


def init_rnd_target_params(key, state_dim, mid_dim, output_dim=1):
    """Matches the PyTorch layer_norm() init: weights ~ U(0, 0.1), biases ~ U(0, 0.5).
       Weights stored transposed relative to PyTorch ([in, out])."""
    k1, k2, k3, k4 = jax.random.split(key, 4)
    w1 = jax.random.uniform(k1, (state_dim, mid_dim), jnp.float32, 0.0, 0.1)
    b1 = jax.random.uniform(k2, (mid_dim,), jnp.float32, 0.0, 0.5)
    w2 = jax.random.uniform(k3, (mid_dim, output_dim), jnp.float32, 0.0, 0.1)
    b2 = jax.random.uniform(k4, (output_dim,), jnp.float32, 0.0, 0.5)
    return w1, b1, w2, b2


def _reference_bf16(state, w1, b1, w2, b2):
    # First layer with bf16 MXU operands / f32 accumulation (same as the kernel),
    # second layer in f32.
    h = jnp.dot(state.astype(jnp.bfloat16), w1.astype(jnp.bfloat16),
                preferred_element_type=jnp.float32) + b1
    return jnp.maximum(h, 0.0) @ w2 + b2


def _reference_f32(state, w1, b1, w2, b2):
    return jnp.maximum(state @ w1 + b1, 0.0) @ w2 + b2


if __name__ == "__main__":
    key = jax.random.PRNGKey(0)
    k_state, k_params, k_state2, k_state3 = jax.random.split(key, 4)

    batch, state_dim, mid_dim, output_dim = 8, 32, 64, 1
    state = jax.random.normal(k_state, (batch, state_dim), jnp.float32)
    w1, b1, w2, b2 = init_rnd_target_params(k_params, state_dim, mid_dim, output_dim)
    params = prepare_rnd_target_params(w1, b1, w2, b2)   # hoisted: done once, reused below

    # 1) Tiny batch (grid=(1,), padded tail).
    out = jax.block_until_ready(rnd_target_forward(state, params))
    assert out.shape == (batch, output_dim)
    assert jnp.allclose(out, _reference_bf16(state, w1, b1, w2, b2), atol=2e-2, rtol=2e-2)
    assert jnp.allclose(out, _reference_f32(state, w1, b1, w2, b2), atol=1e-1, rtol=2e-2)

    # 2) Ragged batch with a small user tile -> multi-step grid (TB=16, grid=(3,)).
    state2 = jax.random.normal(k_state2, (40, state_dim), jnp.float32)
    out2 = jax.block_until_ready(rnd_target_forward(state2, params, batch_tile=16))
    assert out2.shape == (40, output_dim)
    assert jnp.allclose(out2, _reference_bf16(state2, w1, b1, w2, b2), atol=2e-2, rtol=2e-2)

    # 3) Aligned batch -> no padding copy, TB=128 (full 128-lane output rows), grid=(2,).
    state3 = jax.random.normal(k_state3, (256, state_dim), jnp.float32)
    out3 = jax.block_until_ready(rnd_target_forward(state3, params))
    assert out3.shape == (256, output_dim)
    assert jnp.allclose(out3, _reference_bf16(state3, w1, b1, w2, b2), atol=2e-2, rtol=2e-2)

    print("KERNEL_OK")
</pallas_src>

<mosaic_0001>
module attributes {stable_mosaic.version = 11 : i64} {
  func.func @_rnd_target_kernel(%arg0: i32, %arg1: memref<16x32xf32, #tpu.memory_space<vmem>>, %arg2: memref<32x128xbf16, #tpu.memory_space<vmem>>, %arg3: memref<1x128xf32, #tpu.memory_space<vmem>>, %arg4: memref<1x128xf32, #tpu.memory_space<vmem>>, %arg5: memref<1x1xf32, #tpu.memory_space<smem>>, %arg6: memref<1x1x16xf32, #tpu.memory_space<vmem>>) attributes {dimension_semantics = [#tpu.dimension_semantics<parallel>], iteration_bounds = array<i64: 1>, scalar_prefetch = 0 : i64, scratch_operands = 0 : i64, tpu.core_type = #tpu.core_type<tc>, window_params = [{transform_indices = @transform_0, window_bounds = array<i64: 16, 32>}, {pipeline_mode = #tpu.pipeline_mode<synchronous>, transform_indices = @transform_1, window_bounds = array<i64: 32, 128>}, {pipeline_mode = #tpu.pipeline_mode<synchronous>, transform_indices = @transform_2, window_bounds = array<i64: 1, 128>}, {pipeline_mode = #tpu.pipeline_mode<synchronous>, transform_indices = @transform_3, window_bounds = array<i64: 1, 128>}, {transform_indices = @transform_4, window_bounds = array<i64: 1, 1>}, {transform_indices = @transform_5, window_bounds = array<i64: 1, 1, 16>}]} {
    %c0 = arith.constant 0 : index
    %c0_0 = arith.constant 0 : index
    %0 = vector.load %arg1[%c0, %c0_0] : memref<16x32xf32, #tpu.memory_space<vmem>>, vector<16x32xf32>
    %1 = arith.truncf %0 : vector<16x32xf32> to vector<16x32xbf16>
    %c0_1 = arith.constant 0 : index
    %c0_2 = arith.constant 0 : index
    %2 = vector.load %arg2[%c0_1, %c0_2] : memref<32x128xbf16, #tpu.memory_space<vmem>>, vector<32x128xbf16>
    %cst = arith.constant dense<0.000000e+00> : vector<16x128xf32>
    %3 = tpu.matmul %1, %2, %cst {dimension_numbers = #tpu.dot_dimension_numbers<[1], [0], [0], [1], [0, 0, 1, 1], [], []>} : vector<16x32xbf16>, vector<32x128xbf16>, vector<16x128xf32> -> vector<16x128xf32>
    %c0_3 = arith.constant 0 : index
    %c0_4 = arith.constant 0 : index
    %4 = vector.load %arg3[%c0_3, %c0_4] : memref<1x128xf32, #tpu.memory_space<vmem>>, vector<1x128xf32>
    %5 = vector.broadcast %4 : vector<1x128xf32> to vector<16x128xf32>
    %6 = arith.addf %3, %5 : vector<16x128xf32>
    %cst_5 = arith.constant 0.000000e+00 : f32
    %7 = vector.broadcast %cst_5 : f32 to vector<16x128xf32>
    %8 = arith.maximumf %6, %7 : vector<16x128xf32>
    %c0_6 = arith.constant 0 : index
    %c0_7 = arith.constant 0 : index
    %9 = vector.load %arg4[%c0_6, %c0_7] : memref<1x128xf32, #tpu.memory_space<vmem>>, vector<1x128xf32>
    %cst_8 = arith.constant dense<0.000000e+00> : vector<1x16xf32>
    %10 = tpu.matmul %9, %8, %cst_8 {dimension_numbers = #tpu.dot_dimension_numbers<[1], [1], [0], [0], [0, 0, 1, 0], [], []>} : vector<1x128xf32>, vector<16x128xf32>, vector<1x16xf32> -> vector<1x16xf32>
    %c0_9 = arith.constant 0 : index
    %c0_10 = arith.constant 0 : index
    %11 = memref.load %arg5[%c0_9, %c0_10] : memref<1x1xf32, #tpu.memory_space<smem>>
    %12 = vector.broadcast %11 : f32 to vector<1x16xf32>
    %13 = arith.addf %10, %12 : vector<1x16xf32>
    %14 = vector.shape_cast %13 : vector<1x16xf32> to vector<1x1x16xf32>
    %c0_11 = arith.constant 0 : index
    %c0_12 = arith.constant 0 : index
    %c0_13 = arith.constant 0 : index
    %15 = vector.load %arg6[%c0_11, %c0_12, %c0_13] : memref<1x1x16xf32, #tpu.memory_space<vmem>>, vector<1x1x16xf32>
    tpu.vector_store %arg6[%c0_11, %c0_12, %c0_13], %14 {strides = array<i32>} : memref<1x1x16xf32, #tpu.memory_space<vmem>>, vector<1x1x16xf32>,
    return
  }
  func.func @transform_0(%arg0: i32) -> (i32, i32) {
    %c0_i32 = arith.constant 0 : i32
    %c0_i32_0 = arith.constant 0 : i32
    return %arg0, %c0_i32 : i32, i32
  }
  func.func @transform_1(%arg0: i32) -> (i32, i32) {
    %c0_i32 = arith.constant 0 : i32
    %c0_i32_0 = arith.constant 0 : i32
    %c0_i32_1 = arith.constant 0 : i32
    return %c0_i32, %c0_i32_0 : i32, i32
  }
  func.func @transform_2(%arg0: i32) -> (i32, i32) {
    %c0_i32 = arith.constant 0 : i32
    %c0_i32_0 = arith.constant 0 : i32
    %c0_i32_1 = arith.constant 0 : i32
    return %c0_i32, %c0_i32_0 : i32, i32
  }
  func.func @transform_3(%arg0: i32) -> (i32, i32) {
    %c0_i32 = arith.constant 0 : i32
    %c0_i32_0 = arith.constant 0 : i32
    %c0_i32_1 = arith.constant 0 : i32
    return %c0_i32, %c0_i32_0 : i32, i32
  }
  func.func @transform_4(%arg0: i32) -> (i32, i32) {
    %c0_i32 = arith.constant 0 : i32
    %c0_i32_0 = arith.constant 0 : i32
    %c0_i32_1 = arith.constant 0 : i32
    return %c0_i32, %c0_i32_0 : i32, i32
  }
  func.func @transform_5(%arg0: i32) -> (i32, i32, i32) {
    %c0_i32 = arith.constant 0 : i32
    %c0_i32_0 = arith.constant 0 : i32
    %c0_i32_1 = arith.constant 0 : i32
    return %arg0, %c0_i32, %c0_i32_0 : i32, i32, i32
  }
}

</mosaic_0001>

<bundles_post_ra>
// kernel: tpu_custom_call.1
= control target key start
LH: loop header
LB: loop body
LE: loop exit
PB: predicated region body
PF: predicated region fallthrough
CT: control target
= control target key end

     0   :  { %11 = vsyncpa [#allocation4], 0  ;;  %s412_s0 = inlined_call_operand.hbm [shape: f32[16,32], index: 0, kind: input, shape index: {}]   ;;  %s413_s1 = inlined_call_operand.hbm [shape: bf16[32,128], index: 1, kind: input, shape index: {}]   ;;  %s414_s2 = inlined_call_operand.vmem [shape: f32[1,128], index: 2, kind: input, shape index: {}]   ;;  %s415_s3 = inlined_call_operand.vmem [shape: f32[1,128], index: 3, kind: input, shape index: {}]   ;;  %s416_s4 = inlined_call_operand.<no memory space> [shape: f32[1,1], index: 4, kind: input, shape index: {}]   ;;  %s417_s5 = inlined_call_operand.hbm [shape: f32[1,1,16], index: 5, kind: output, shape index: {}]  }
   0x1   :  { %12 = vsyncpa [#allocation7], 0 }
   0x2   :  { %13 = vsyncpa [#allocation5], 0  ;;  %s327_s18 = smov [#allocation3]   ;;  %s255_s22 = scalar_lea.hbm %s412_s0, 256 }
   0x3   :  { %s19_s19 = sshll.u32 %s327_s18, 4  ;;  %p256_p0 = scmp.ne.s32.totalorder %s412_s0, %s255_s22  ;;  %s20_s19 = int_to_ptr.vmem [resolvable:$true] %s19_s19 }
   0x4   :  { %p259_p1 = scmp.lt.u32.totalorder %s255_s22, %s412_s0 }
   0x6   :  { %p261_p2 = pnand %p259_p1, %p256_p0 }
   0x8   :  { %264 = shalt.err (!%p261_p2)
}
   0x9   :  { %s265_s27 = scalar_lea.vmem %s20_s19, 256  ;;  %p270_p4 = scmp.lt.s32.totalorder %s20_s19, %s20_s19 }
   0xa   :  { %p266_p3 = scmp.ne.s32.totalorder %s20_s19, %s265_s27  ;;  %p271_p5 = scmp.lt.s32.totalorder %s265_s27, %s265_s27 }
   0xc   :  { %p272_p6 = por %p271_p5, %p270_p4 }
   0xe   :  { %p273_p7 = pnand %p272_p6, %p266_p3 }
  0x10   :  { %276 = shalt.err (!%p273_p7)
}
  0x11   :  { %s328_s28 = smov 128   ;;  %s329_s29 = smov 8  }
  0x12   :  { %25 = dma.hbm_to_vmem [thread:$0]  %s412_s0, 256, %s20_s19, [#allocation4], %s328_s28, %s328_s28, %s329_s29  }
  0x13   :  { %s330_s7 = smov [#allocation6]   ;;  %s277_s11 = scalar_lea.hbm %s413_s1, 256 }
  0x14   :  { %s31_s8 = sshll.u32 %s330_s7, 4  ;;  %p278_p8 = scmp.ne.s32.totalorder %s413_s1, %s277_s11  ;;  %s32_s8 = int_to_ptr.vmem [resolvable:$true] %s31_s8 }
  0x15   :  { %p281_p9 = scmp.lt.u32.totalorder %s277_s11, %s413_s1 }
  0x17   :  { %p283_p10 = pnand %p281_p9, %p278_p8 }
  0x19   :  { %286 = shalt.err (!%p283_p10)
}
  0x1a   :  { %s287_s16 = scalar_lea.vmem %s32_s8, 256  ;;  %p292_p12 = scmp.lt.s32.totalorder %s32_s8, %s32_s8 }
  0x1b   :  { %p288_p11 = scmp.ne.s32.totalorder %s32_s8, %s287_s16  ;;  %p293_p13 = scmp.lt.s32.totalorder %s287_s16, %s287_s16 }
  0x1d   :  { %p294_p0 = por %p293_p13, %p292_p12 }
  0x1f   :  { %p295_p1 = pnand %p294_p0, %p288_p11 }
  0x21   :  { %298 = shalt.err (!%p295_p1)
}
  0x22   :  { %s331_s0 = smov 64   ;;  %s332_s17 = smov 4  }
  0x23   :  { %37 = dma.hbm_to_vmem [thread:$0]  %s413_s1, 256, %s32_s8, [#allocation7], %s331_s0, %s331_s0, %s332_s17  }
  0x24   :  { %321 = dma.done.wait [#allocation4], 256  }
  0x25   :  { %322 = vsyncadd [#allocation4], 4294967040 }
  0x26   :  { %323 = dma.done.wait [#allocation7], 256  }
  0x27   :  { %324 = vsyncadd [#allocation7], 4294967040  ;;  %v333_v0 = vmov 0.0   ;;  %vm334_vm0 = vmmov 0   ;;  %v253_v1 = vld [vmem:[#allocation6] sm:$0xff]   ;;  %v254_v2 = vld [vmem:[#allocation6 + $0x8] sm:$0xff]   ;;  %v126_v18 = vstv %s416_s4 }
  0x28   :  { %225 = vmatprep.subr.bf16.mxu0 %v333_v0  ;;  %229 = vmatprep.mubr.msk.bf16.mxu0 %vm334_vm0, %v333_v0  ;;  %v51_v3 = vld [vmem:[#allocation3] sm:$0xff]  ;;  %v52_v4 = vld [vmem:[#allocation3 + $0x8] sm:$0xff]  ;;  %vm77_vm1 = vcmask 261120   ;;  %v335_v6 = vmov 0.0|0.0   ;;  %vm197_vm2 = vcmask 122880  }
  0x29   :  { %237 = vmatprep.mubr.msk.f32.mxu1 %vm334_vm0, %v333_v0  ;;  %226 = vmatpush3.bf16.msra.mxu0 %v253_v1  ;;  %v53_v5 = vpack.c.bf16 %v52_v4, %v51_v3  ;;  %v215_v7 = vld [vmem:[%s414_s2] ss:$0 sm:$0xff]  ;;  %s336_s2 = smov [#allocation8]  }
  0x2a   :  { %227 = vmatprep.subr.bf16.mxu0 %v333_v0  ;;  %240 = vmatprep.subr.bf16.mxu1 %v335_v6  ;;  %v124_v17 = vld [vmem:[%s415_s3] sm:$0x1]  ;;  %s205_s25 = sshll.u32 %s336_s2, 4  ;;  %s206_s25 = int_to_ptr.vmem [resolvable:$true] %s205_s25 }
  0x2b   :  { %s299_s26 = scalar_lea.vmem %s206_s25, 16  ;;  %s303_s27 = scalar_lea.vmem %s206_s25, 32 }
  0x2c   :  { %p300_p2 = scmp.ne.s32.totalorder %s206_s25, %s299_s26  ;;  %p304_p3 = scmp.lt.s32.totalorder %s206_s25, %s206_s25 }
  0x2d   :  { %228 = vmatpush3.bf16.msra.mxu0 %v254_v2  ;;  %p305_p4 = scmp.lt.s32.totalorder %s303_s27, %s299_s26 }
  0x2f   :  { %p306_p5 = por %p305_p4, %p304_p3 }
  0x30   :  { %230 = vmatmul.mubr.msk.bf16.vlgmr.msra.gmra.mrb[0].mxu0 %vm77_vm1, %v53_v5 }
  0x31   :  { %p307_p6 = pnand %p306_p5, %p300_p2 }
 0x103   :  { %v115_v8 = vpop.f32.mrb[0].mxu0 }
 0x104   :  { %v116_v9 = vadd.f32 %v215_v7, %v115_v8  ;;  %v231_v10 = vpop.f32.mrb[1].mxu0 }
 0x105   :  { %v118_v11 = vpop.f32.mrb[2].mxu0 }
 0x106   :  { %v119_v12 = vadd.f32 %v215_v7, %v118_v11  ;;  %v232_v13 = vpop.f32.mrb[3].mxu0  ;;  %v122_v14 = vmax.f32 %v116_v9, 0.0 }
 0x108   :  { %v123_v15 = vmax.f32 %v119_v12, 0.0 }
 0x10a   :  { %v241_v16 = vpack.c.bf16 %v123_v15, %v122_v14 }
 0x10c   :  { %242 = vmatpush3.bf16.xpose.msra.mxu1 %v241_v16 }
 0x113   :  { %238 = vmatmul.mubr.f32.vlgmr.msra.gmra.mrb[0].mxu1 %v124_v17 }
 0x1e6   :  { %v193_v19 = vpop.f32.mrb[0].mxu1 }
 0x1e7   :  { %v194_v20 = vadd.f32 %v193_v19, %v126_v18  ;;  %v239_v21 = vpop.f32.mrb[1].mxu1 }
 0x1e9   :  { %198 = vst.msk [vmem:[#allocation8] sm:$0x1] %vm197_vm2, %v194_v20 }
 0x1ea   :  { %310 = shalt.err (!%p307_p6)
}
 0x1eb   :  { %s311_s4 = scalar_lea.hbm %s417_s5, 16 }
 0x1ec   :  { %p312_p7 = scmp.ne.s32.totalorder %s417_s5, %s311_s4  ;;  %p315_p8 = scmp.lt.u32.totalorder %s311_s4, %s417_s5 }
 0x1ee   :  { %p317_p9 = pnand %p315_p8, %p312_p7 }
 0x1f0   :  { %320 = shalt.err (!%p317_p9)
}
 0x1f1   :  { %208 = dma.vmem_to_hbm [thread:$0]  %s206_s25, 16, %s417_s5, [#allocation5]  }
 0x1f2   :  { %325 = dma.done.wait [#allocation5], 16  }
 0x1f3   :  { %326 = vsyncadd [#allocation5], 4294967280 }
 0x1f4   :  { %212 = vsyncpa [#allocation4], 1 }
 0x1f5   :  { %213 = vsyncpa [#allocation7], 1 }
 0x1f6   :  { %214 = vsyncpa [#allocation5], 1 }

</bundles_post_ra>
